<compile_context>
chip_gen: v7x
topology: tpu7x:2x2x1
jax: 0.10.0
libtpu: 0.0.40
codegen_flags: <defaults>
</compile_context>

<pallas_src>
import jax
import jax.numpy as jnp
from jax.experimental import pallas as pl
from jax.experimental.pallas import tpu as pltpu


def _critic_kernel(x_ref, w1_ref, b1_ref, w2_ref, b2_ref, o_ref):
    # fc1: single K=D matmul (concat folded in the wrapper), f32 accumulate.
    h = jnp.dot(x_ref[...], w1_ref[...], preferred_element_type=jnp.float32)
    # Fused bias-add + ReLU; downcast to bf16 only at the MXU operand boundary.
    h = jnp.maximum(h + b1_ref[...], 0.0)
    # fc2: bf16 operands, f32 accumulate.
    o = jnp.dot(h.astype(w2_ref.dtype), w2_ref[...], preferred_element_type=jnp.float32)
    o_ref[...] = jnp.maximum(o + b2_ref[...], 0.0).astype(o_ref.dtype)


def _round_up(x, m):
    return (x + m - 1) // m * m


def _as_bf16(x):
    return x if x.dtype == jnp.bfloat16 else x.astype(jnp.bfloat16)


def critic_base_forward(state, action, w1, b1, w2, b2, *,
                        max_block=512, out_dtype=jnp.float32):
    """Fused CriticBase forward.

    state : (B, Ds), action : (B, Da)
    w1    : (Ds+Da, H1)  (ideally already bf16), b1 : (1, H1) or (H1,)
    w2    : (H1, H2)     (ideally already bf16), b2 : (1, H2) or (H2,)
    returns (B, H2) in out_dtype (f32 accumulation regardless).
    """
    B, Ds = state.shape
    Ba, Da = action.shape
    assert Ba == B
    D = Ds + Da
    H1 = w1.shape[1]
    H2 = w2.shape[1]
    assert w1.shape == (D, H1) and w2.shape == (H1, H2)

    # Fold torch.cat into a single (B, D) bf16 operand (one MXU pass, one input
    # pipeline). The concat copy is tiny (~B*D*2 bytes) and effectively free.
    x = jnp.concatenate([state, action], axis=1).astype(jnp.bfloat16)

    # Weights should already be bf16 (hoisted cast); only cast here as a fallback.
    w1_b = _as_bf16(w1)
    w2_b = _as_bf16(w2)
    b1_f = b1.astype(jnp.float32).reshape(1, H1)
    b2_f = b2.astype(jnp.float32).reshape(1, H2)

    # Batch tile: the kernel is per-grid-step-overhead bound, so use as few,
    # as-large tiles as possible -- but keep >=2 grid steps when B >= 16 so
    # dimension_semantics=("parallel",) can shard across v7x's two TensorCores.
    if B <= max_block:
        tb = B if B < 16 else min(B, _round_up(pl.cdiv(B, 2), 8))
    else:
        tb = max_block
    grid = (pl.cdiv(B, tb),)

    out_bytes = jnp.dtype(out_dtype).itemsize
    bytes_accessed = (
        x.size * 2                              # fused activation input
        + w1_b.size * 2 + w2_b.size * 2         # weights (resident, DMA'd once)
        + b1_f.size * 4 + b2_f.size * 4         # biases
        + B * H2 * out_bytes                    # output
    )
    cost = pl.CostEstimate(
        flops=2 * B * (D * H1 + H1 * H2),
        transcendentals=0,
        bytes_accessed=bytes_accessed,
    )

    return pl.pallas_call(
        _critic_kernel,
        out_shape=jax.ShapeDtypeStruct((B, H2), out_dtype),
        grid=grid,
        in_specs=[
            pl.BlockSpec((tb, D), lambda i: (i, 0)),     # fused [state|action] tile (pipelined)
            pl.BlockSpec((D, H1), lambda i: (0, 0)),     # weights: block index never
            pl.BlockSpec((1, H1), lambda i: (0, 0)),     #   changes -> resident in VMEM
            pl.BlockSpec((H1, H2), lambda i: (0, 0)),
            pl.BlockSpec((1, H2), lambda i: (0, 0)),
        ],
        out_specs=pl.BlockSpec((tb, H2), lambda i: (i, 0)),
        compiler_params=pltpu.CompilerParams(
            dimension_semantics=("parallel",),   # shard batch tiles across TCs on v7x
            vmem_limit_bytes=16 << 20,           # headroom for tb up to 512, safe on v7x (64 MiB)
        ),
        cost_estimate=cost,
    )(x, w1_b, b1_f, w2_b, b2_f)


def init_params(key, input_dim, hidden_dims=(256, 256)):
    """Deterministic init mirroring nn.Linear's U(-1/sqrt(fan_in), 1/sqrt(fan_in)).

    Weights are stored in bf16 once here so the per-call wrapper does no casting
    (biases stay f32 for the f32 bias-add inside the kernel).
    """
    k1, k2, k3, k4 = jax.random.split(key, 4)
    h1, h2 = hidden_dims
    bound1 = 1.0 / jnp.sqrt(jnp.float32(input_dim))
    bound2 = 1.0 / jnp.sqrt(jnp.float32(h1))
    # stored as (in, out) = transpose of PyTorch's (out, in) weight
    w1 = jax.random.uniform(k1, (input_dim, h1), jnp.float32, -bound1, bound1)
    b1 = jax.random.uniform(k2, (1, h1), jnp.float32, -bound1, bound1)
    w2 = jax.random.uniform(k3, (h1, h2), jnp.float32, -bound2, bound2)
    b2 = jax.random.uniform(k4, (1, h2), jnp.float32, -bound2, bound2)
    return w1.astype(jnp.bfloat16), b1, w2.astype(jnp.bfloat16), b2


if __name__ == "__main__":
    key = jax.random.PRNGKey(0)
    k_s, k_a, k_p = jax.random.split(key, 3)

    # CriticBase(input_dims=[32], hidden_dims=[256, 256]); B=256 so the batch grid
    # actually gets 2 parallel tiles (tb=128) and the MXU is exercised.
    B, Ds, Da = 256, 24, 8
    hidden_dims = (256, 256)
    D = Ds + Da

    state = jax.random.normal(k_s, (B, Ds), jnp.float32)
    action = jax.random.normal(k_a, (B, Da), jnp.float32)
    w1, b1, w2, b2 = init_params(k_p, D, hidden_dims)

    out = critic_base_forward(state, action, w1, b1, w2, b2)  # out_dtype=jnp.bfloat16 also works
    out = jax.block_until_ready(out)

    # Reference in plain JAX, same bf16-operand / f32-accumulate path.
    x = jnp.concatenate([state, action], axis=1).astype(jnp.bfloat16)
    h = jnp.maximum(
        jnp.dot(x, w1, preferred_element_type=jnp.float32) + b1, 0.0
    )
    ref = jnp.maximum(
        jnp.dot(h.astype(jnp.bfloat16), w2, preferred_element_type=jnp.float32) + b2, 0.0
    )

    assert out.shape == (B, hidden_dims[1])
    assert jnp.allclose(out, ref, atol=1e-2, rtol=1e-2), float(jnp.max(jnp.abs(out - ref)))

    print("KERNEL_OK")
</pallas_src>

<mosaic_0001>
module attributes {stable_mosaic.version = 11 : i64} {
  func.func @_critic_kernel(%arg0: i32, %arg1: memref<128x32xbf16, #tpu.memory_space<vmem>>, %arg2: memref<32x256xbf16, #tpu.memory_space<vmem>>, %arg3: memref<1x256xf32, #tpu.memory_space<vmem>>, %arg4: memref<256x256xbf16, #tpu.memory_space<vmem>>, %arg5: memref<1x256xf32, #tpu.memory_space<vmem>>, %arg6: memref<128x256xf32, #tpu.memory_space<vmem>>) attributes {dimension_semantics = [#tpu.dimension_semantics<parallel>], iteration_bounds = array<i64: 2>, scalar_prefetch = 0 : i64, scratch_operands = 0 : i64, tpu.core_type = #tpu.core_type<tc>, window_params = [{transform_indices = @transform_0, window_bounds = array<i64: 128, 32>}, {pipeline_mode = #tpu.pipeline_mode<synchronous>, transform_indices = @transform_1, window_bounds = array<i64: 32, 256>}, {pipeline_mode = #tpu.pipeline_mode<synchronous>, transform_indices = @transform_2, window_bounds = array<i64: 1, 256>}, {pipeline_mode = #tpu.pipeline_mode<synchronous>, transform_indices = @transform_3, window_bounds = array<i64: 256, 256>}, {pipeline_mode = #tpu.pipeline_mode<synchronous>, transform_indices = @transform_4, window_bounds = array<i64: 1, 256>}, {transform_indices = @transform_5, window_bounds = array<i64: 128, 256>}]} {
    %c0 = arith.constant 0 : index
    %c0_0 = arith.constant 0 : index
    %0 = vector.load %arg1[%c0, %c0_0] : memref<128x32xbf16, #tpu.memory_space<vmem>>, vector<128x32xbf16>
    %c0_1 = arith.constant 0 : index
    %c0_2 = arith.constant 0 : index
    %1 = vector.load %arg2[%c0_1, %c0_2] : memref<32x256xbf16, #tpu.memory_space<vmem>>, vector<32x256xbf16>
    %cst = arith.constant dense<0.000000e+00> : vector<128x256xf32>
    %2 = tpu.matmul %0, %1, %cst {dimension_numbers = #tpu.dot_dimension_numbers<[1], [0], [0], [1], [0, 0, 1, 1], [], []>} : vector<128x32xbf16>, vector<32x256xbf16>, vector<128x256xf32> -> vector<128x256xf32>
    %c0_3 = arith.constant 0 : index
    %c0_4 = arith.constant 0 : index
    %3 = vector.load %arg3[%c0_3, %c0_4] : memref<1x256xf32, #tpu.memory_space<vmem>>, vector<1x256xf32>
    %4 = vector.broadcast %3 : vector<1x256xf32> to vector<128x256xf32>
    %5 = arith.addf %2, %4 : vector<128x256xf32>
    %cst_5 = arith.constant 0.000000e+00 : f32
    %6 = vector.broadcast %cst_5 : f32 to vector<128x256xf32>
    %7 = arith.maximumf %5, %6 : vector<128x256xf32>
    %8 = arith.truncf %7 : vector<128x256xf32> to vector<128x256xbf16>
    %c0_6 = arith.constant 0 : index
    %c0_7 = arith.constant 0 : index
    %9 = vector.load %arg4[%c0_6, %c0_7] : memref<256x256xbf16, #tpu.memory_space<vmem>>, vector<256x256xbf16>
    %cst_8 = arith.constant dense<0.000000e+00> : vector<128x256xf32>
    %10 = tpu.matmul %8, %9, %cst_8 {dimension_numbers = #tpu.dot_dimension_numbers<[1], [0], [0], [1], [0, 0, 1, 1], [], []>} : vector<128x256xbf16>, vector<256x256xbf16>, vector<128x256xf32> -> vector<128x256xf32>
    %c0_9 = arith.constant 0 : index
    %c0_10 = arith.constant 0 : index
    %11 = vector.load %arg5[%c0_9, %c0_10] : memref<1x256xf32, #tpu.memory_space<vmem>>, vector<1x256xf32>
    %12 = vector.broadcast %11 : vector<1x256xf32> to vector<128x256xf32>
    %13 = arith.addf %10, %12 : vector<128x256xf32>
    %cst_11 = arith.constant 0.000000e+00 : f32
    %14 = vector.broadcast %cst_11 : f32 to vector<128x256xf32>
    %15 = arith.maximumf %13, %14 : vector<128x256xf32>
    %c0_12 = arith.constant 0 : index
    %c0_13 = arith.constant 0 : index
    %16 = vector.load %arg6[%c0_12, %c0_13] : memref<128x256xf32, #tpu.memory_space<vmem>>, vector<128x256xf32>
    tpu.vector_store %arg6[%c0_12, %c0_13], %15 {strides = array<i32>} : memref<128x256xf32, #tpu.memory_space<vmem>>, vector<128x256xf32>,
    return
  }
  func.func @transform_0(%arg0: i32) -> (i32, i32) {
    %c0_i32 = arith.constant 0 : i32
    %c0_i32_0 = arith.constant 0 : i32
    return %arg0, %c0_i32 : i32, i32
  }
  func.func @transform_1(%arg0: i32) -> (i32, i32) {
    %c0_i32 = arith.constant 0 : i32
    %c0_i32_0 = arith.constant 0 : i32
    %c0_i32_1 = arith.constant 0 : i32
    return %c0_i32, %c0_i32_0 : i32, i32
  }
  func.func @transform_2(%arg0: i32) -> (i32, i32) {
    %c0_i32 = arith.constant 0 : i32
    %c0_i32_0 = arith.constant 0 : i32
    %c0_i32_1 = arith.constant 0 : i32
    return %c0_i32, %c0_i32_0 : i32, i32
  }
  func.func @transform_3(%arg0: i32) -> (i32, i32) {
    %c0_i32 = arith.constant 0 : i32
    %c0_i32_0 = arith.constant 0 : i32
    %c0_i32_1 = arith.constant 0 : i32
    return %c0_i32, %c0_i32_0 : i32, i32
  }
  func.func @transform_4(%arg0: i32) -> (i32, i32) {
    %c0_i32 = arith.constant 0 : i32
    %c0_i32_0 = arith.constant 0 : i32
    %c0_i32_1 = arith.constant 0 : i32
    return %c0_i32, %c0_i32_0 : i32, i32
  }
  func.func @transform_5(%arg0: i32) -> (i32, i32) {
    %c0_i32 = arith.constant 0 : i32
    %c0_i32_0 = arith.constant 0 : i32
    return %arg0, %c0_i32 : i32, i32
  }
}

</mosaic_0001>

<bundles_post_ra>
// kernel: tpu_custom_call.1
= control target key start
LH: loop header
LB: loop body
LE: loop exit
PB: predicated region body
PF: predicated region fallthrough
CT: control target
= control target key end

     0   :  { %10 = vsyncpa [#allocation3], 0  ;;  %s1645_s0 = inlined_call_operand.vmem [shape: bf16[256,32], index: 0, kind: input, shape index: {}]   ;;  %s1646_s1 = inlined_call_operand.vmem [shape: bf16[32,256], index: 1, kind: input, shape index: {}]   ;;  %s1647_s2 = inlined_call_operand.vmem [shape: f32[1,256], index: 2, kind: input, shape index: {}]   ;;  %s1648_s3 = inlined_call_operand.hbm [shape: bf16[256,256], index: 3, kind: input, shape index: {}]   ;;  %s1649_s4 = inlined_call_operand.vmem [shape: f32[1,256], index: 4, kind: input, shape index: {}]   ;;  %s1650_s5 = inlined_call_operand.hbm [shape: f32[256,256], index: 5, kind: output, shape index: {}]  }
   0x1   :  { %11 = vsyncpa [#allocation4], 0 }
   0x2   :  { %13 = vsyncpa [#allocation4 + $0x1], 0  ;;  %s1341_s18 = smov 0   ;;  %s1343_s19 = smov 0  }
   0x3   :  { %s1345_s20 = smov 0   ;;  %s1347_s21 = smov 0  }
   0x4 LB: > { %s1362_s22 = sadd.s32 4294967295, %s1302_s21   ;;  %s990_s23 = sadd.s32 4294967294, %s1302_s21   ;;  %s1302_s21 = sphi %s1347_s21, %s1666_s21   ;;  %s1298_s20 = sphi %s1345_s20, %s1665_s20   ;;  %s1294_s19 = sphi %s1343_s19, %s1664_s19   ;;  %s1290_s18 = sphi %s1341_s18, %s1663_s18  }
   0x5   : > { %s1366_s24 = sadd.s32 1, %s1302_s21   ;;  %s136_s25 = sadd.s32 1, %s1298_s20 }
   0x6   : > { %s133_s26 = ssub.s32 %s1302_s21, %s1366_s24  ;;  %p146_p0 = scmp.ne.s32.totalorder %s1298_s20, %s1294_s19 }
   0x7   : > { %p134_p1 = scmp.eq.s32.totalorder %s133_s26, 0  ;;  %p147_p2 = scmp.eq.s32.totalorder %s1362_s22, 1 }
   0x8   : > { %p152_p3 = scmp.ne.s32.totalorder %s1294_s19, %s1290_s18  ;;  %p153_p4 = scmp.eq.s32.totalorder %s990_s23, 1 }
   0x9   : > { %s1377_s27 = scalar_select %p134_p1, %s1298_s20, %s136_s25  }
   0xa   : > { %p1379_p5 = por %p147_p2, %p146_p0  ;;  %p1383_p6 = por %p153_p4, %p152_p3 }
   0xb   : > { %p991_p7 = scmp.ge.s32.totalorder %s1302_s21, 1  ;;  %p160_p8 = scmp.lt.s32.totalorder %s1302_s21, 3 }
   0xc   : > { %s1654_s28 = scalar_select %p1379_p5, 1, 0 }
   0xd   : > { %s1655_s29 = scalar_select %p1383_p6, 1, 0 }
   0xe   : > { %p1651_p9 = scmp.eq.s32.totalorder %s1362_s22, 0  ;;  %p1390_p10 = pnand %p991_p7, %p160_p8 }
   0xf   : > { %s1304_s6 = smov [#allocation2]   ;;  %s1208_s11 = scalar_lea.hbm %s1648_s3, 4096 }
  0x10   : > { %s1656_s30 = scalar_select %p1390_p10, 1, 0 }
  0x11   : > { %s178_s7 = sshll.u32 %s1304_s6, 4  ;;  %p1097_p11 = pneg %p1390_p10  ;;  %s179_s7 = int_to_ptr.vmem [resolvable:$true] %s178_s7 }
  0x12   : > { %p1209_p13 = scmp.ne.s32.totalorder %s1648_s3, %s1208_s11  ;;  %p1215_p3 = scmp.lt.u32.totalorder %s1208_s11, %s1648_s3 }
  0x13   : > { %p1398_p12 = pnand %p1651_p9, %p1097_p11 }
  0x15   : > { %p1210_p0 = pneg %p1398_p12 }
  0x17   : > { %p1211_p1 = pnand %p1210_p0, %p1209_p13 }
  0x19   : > { %p1212_p2 = pneg %p1211_p1 }
  0x1b   : > { %p1217_p4 = pnand %p1215_p3, %p1212_p2 }
  0x1d   : > { %1220 = shalt.err (!%p1217_p4)
}
  0x1e   : > { %s1221_s16 = scalar_lea.vmem %s179_s7, 4096  ;;  %p1229_p9 = scmp.lt.s32.totalorder %s179_s7, %s179_s7 }
  0x1f   : > { %p1222_p7 = scmp.ne.s32.totalorder %s179_s7, %s1221_s16  ;;  %p1230_p6 = scmp.lt.s32.totalorder %s1221_s16, %s1221_s16 }
  0x21   : > { %p1224_p8 = pnand %p1222_p7, %p1210_p0  ;;  %p1231_p5 = por %p1230_p6, %p1229_p9 }
  0x23   : > { %p1225_p11 = pneg %p1224_p8 }
  0x25   : > { %p1232_p10 = pnand %p1231_p5, %p1225_p11 }
  0x27   : > { %1235 = shalt.err (!%p1232_p10)
}
  0x28   : > { %s1305_s17 = smov 128   ;;  %s1306_s23 = smov 8  }
  0x29   : > { %1100 = dma.hbm_to_vmem [thread:$0]  (!%p1398_p12), %s1648_s3, 4096, %s179_s7, [#allocation3], %s1305_s17, %s1305_s17, %s1306_s23  }
  0x2a   : > { %p1658_p13 = scmp.ne.s32.totalorder %s1656_s30, 0 }
  0x2b   : > { %p1659_p1 = scmp.eq.s32.totalorder (!%p1658_p13), %s1362_s22, 0 }
  0x2c   : > { %206 = sbr.rel (%p1658_p13) target bundleno = 573 (0x23d), region = 40 }
  0x33   : > { %1281 = dma.done.wait (%p1659_p1), [#allocation3], 4096   ;;  %p1660_p0 = pmov %p1659_p1 }
  0x34   : > { %s997_s6 = sshll.u32 %s1362_s22, 4  ;;  %v1307_v0 = vmov 0   ;;  %v1146_v1 = vld [vmem:[%s1646_s1 + $0x4] ss:$8 sps:$4 sm:$0xff]   ;;  %v1148_v2 = vld [vmem:[%s1646_s1] ss:$8 sps:$4 sm:$0xff]   ;;  %v264_v45 = vlaneseq }
  0x35   : > { %1283 = vsyncadd (%p1660_p0), [#allocation3], 4294963200  ;;  %391 = vmatprep.mubr.bf16.mxu0 %v1307_v0  ;;  %p235_p5 = scmp.lt.s32.totalorder %s997_s6, 31  ;;  %359 = vmatprep.subr.bf16.mxu0 %v1146_v1  ;;  %v1149_v3 = vld [vmem:[%s1646_s1 + $0x14] ss:$8 sps:$4 sm:$0xff]   ;;  %vm334_vm0 = vcmask 261120  }
  0x36   : > { %360 = vmatpush1.bf16.msra.mxu0 %v1148_v2  ;;  %v1151_v4 = vld [vmem:[%s1646_s1 + $0x10] ss:$8 sps:$4 sm:$0xff]   ;;  %v1160_v6 = vld [vmem:[#allocation2] ss:$8 sps:$4 sm:$0xff]   ;;  %v1162_v7 = vld [vmem:[#allocation2 + $0x4] ss:$8 sps:$4 sm:$0xff]  }
  0x37   : > { %s1668_s6 = smov (!%p235_p5, %s997_s6), 31  ;;  %361 = vmatprep.subr.bf16.mxu0 %v1149_v3  ;;  %v1165_v8 = vld [vmem:[#allocation2 + $0x14] ss:$8 sps:$4 sm:$0xff]   ;;  %1059 = vmatprep.subr.bf16.mxu1 %v1162_v7  ;;  %v1163_v10 = vld [vmem:[#allocation2 + $0x10] ss:$8 sps:$4 sm:$0xff]   ;;  %v1466_v46 = vshrl.u32 %v264_v45, 7 }
  0x38   : > { %s998_s8 = sshll.u32 %s1668_s6, 2  ;;  %1075 = vmatpush1.bf16.msra.mxu1 %v1160_v6  ;;  %v1168_v11 = vld [vmem:[#allocation2 + $0x24] ss:$8 sps:$4 sm:$0xff]   ;;  %v1166_v12 = vld [vmem:[#allocation2 + $0x20] ss:$8 sps:$4 sm:$0xff]   ;;  %s1058_s30 = sshll.u32 %s1362_s22, 12 }
  0x39   : > { %s1435_s13 = scalar_lea.vmem %s1645_s0, %s998_s8  ;;  %1060 = vmatprep.subr.bf16.mxu1 %v1165_v8  ;;  %v1171_v13 = vld [vmem:[#allocation2 + $0x34] ss:$8 sps:$4 sm:$0xff]   ;;  %v1169_v15 = vld [vmem:[#allocation2 + $0x30] ss:$8 sps:$4 sm:$0xff]   ;;  %v1174_v16 = vld [vmem:[#allocation2 + $0x44] ss:$8 sps:$4 sm:$0xff]  }
  0x3a   : > { %v1152_v5 = vld [vmem:[%s1435_s13] sm:$0xff]   ;;  %362 = vmatpush1.bf16.msra.mxu0 %v1151_v4  ;;  %v1153_v9 = vld [vmem:[%s1435_s13 + $0x8] sm:$0xff]   ;;  %v1154_v14 = vld [vmem:[%s1435_s13 + $0x10] sm:$0xff]   ;;  %v266_v47 = vsub.s32 0, %v1466_v46  ;;  %v270_v49 = vsub.s32 1, %v1466_v46  ;;  %s231_s8 = sand.u32 1, %s1294_s19  }
  0x3b   : > { %724 = vmatprep.subr.bf16.mxu0 %v1162_v7  ;;  %v1172_v17 = vld [vmem:[#allocation2 + $0x40] ss:$8 sps:$4 sm:$0xff]   ;;  %v1177_v18 = vld [vmem:[#allocation2 + $0x54] ss:$8 sps:$4 sm:$0xff]   ;;  %v1175_v20 = vld [vmem:[#allocation2 + $0x50] ss:$8 sps:$4 sm:$0xff]  }
  0x3c   : > { %1076 = vmatpush1.bf16.msra.mxu1 %v1163_v10  ;;  %v1155_v19 = vld [vmem:[%s1435_s13 + $0x18] sm:$0xff]   ;;  %v1180_v21 = vld [vmem:[#allocation2 + $0x64] ss:$8 sps:$4 sm:$0xff]   ;;  %v1178_v22 = vld [vmem:[#allocation2 + $0x60] ss:$8 sps:$4 sm:$0xff]   ;;  %s996_s9 = sshll.u32 %s231_s8, 8 }
  0x3d   : > { %1011 = vmatmul.mubr.msk.bf16.vlgmr.msra.gmra.mrb[0].mxu0 %vm334_vm0, %v1152_v5  ;;  %1061 = vmatprep.subr.bf16.mxu1 %v1168_v11  ;;  %v1183_v23 = vld [vmem:[#allocation2 + $0x74] ss:$8 sps:$4 sm:$0xff]   ;;  %v1156_v24 = vld [vmem:[%s1435_s13 + $0x20] sm:$0xff]   ;;  %v1181_v25 = vld [vmem:[#allocation2 + $0x70] ss:$8 sps:$4 sm:$0xff]   ;;  %s1531_s10 = scalar_lea.vmem [#allocation5], %s996_s9 }
  0x3e   : > { %401 = vmatprep.mubr.bf16.mxu0 %v1307_v0  ;;  %725 = vmatpush1.bf16.msra.mxu0 %v1160_v6  ;;  %v1186_v26 = vld [vmem:[#allocation2 + $0x84] ss:$8 sps:$4 sm:$0xff]   ;;  %v1184_v27 = vld [vmem:[#allocation2 + $0x80] ss:$8 sps:$4 sm:$0xff]   ;;  %v1189_v28 = vld [vmem:[#allocation2 + $0x94] ss:$8 sps:$4 sm:$0xff]  }
  0x3f   : > { %726 = vmatprep.subr.bf16.mxu0 %v1165_v8  ;;  %v1157_v29 = vld [vmem:[%s1435_s13 + $0x28] sm:$0xff]   ;;  %v1187_v30 = vld [vmem:[#allocation2 + $0x90] ss:$8 sps:$4 sm:$0xff]   ;;  %v1195_v33 = vld [vmem:[#allocation2 + $0xb4] ss:$8 sps:$4 sm:$0xff]   ;;  %s916_s7 = sshll.u32 %s1531_s10, 4  ;;  %s1597_s7 = int_to_ptr.vmem [resolvable:$true] %s916_s7 }
  0x40   : > { %1077 = vmatpush1.bf16.msra.mxu1 %v1166_v12  ;;  %v1192_v31 = vld [vmem:[#allocation2 + $0xa4] ss:$8 sps:$4 sm:$0xff]   ;;  %v1190_v32 = vld [vmem:[#allocation2 + $0xa0] ss:$8 sps:$4 sm:$0xff]   ;;  %v1158_v34 = vld [vmem:[%s1435_s13 + $0x30] sm:$0xff]   ;;  %s1604_s22 = scalar_lea.sflag [#allocation4], %s231_s8 }
  0x41   : > { %1062 = vmatprep.subr.bf16.mxu1 %v1171_v13  ;;  %v1193_v35 = vld [vmem:[#allocation2 + $0xb0] ss:$8 sps:$4 sm:$0xff]   ;;  %v1198_v36 = vld [vmem:[#allocation2 + $0xc4] ss:$8 sps:$4 sm:$0xff]   ;;  %v1196_v37 = vld [vmem:[#allocation2 + $0xc0] ss:$8 sps:$4 sm:$0xff]  }
  0x42   : > { %727 = vmatpush1.bf16.msra.mxu0 %v1163_v10  ;;  %v1201_v38 = vld [vmem:[#allocation2 + $0xd4] ss:$8 sps:$4 sm:$0xff]   ;;  %v1199_v40 = vld [vmem:[#allocation2 + $0xd0] ss:$8 sps:$4 sm:$0xff]   ;;  %v1204_v41 = vld [vmem:[#allocation2 + $0xe4] ss:$8 sps:$4 sm:$0xff]  }
  0x43   : > { %728 = vmatprep.subr.bf16.mxu0 %v1168_v11  ;;  %v1159_v39 = vld [vmem:[%s1435_s13 + $0x38] sm:$0xff]   ;;  %v1202_v42 = vld [vmem:[#allocation2 + $0xe0] ss:$8 sps:$4 sm:$0xff]   ;;  %s1595_s13 = scalar_lea.hbm %s1650_s5, %s1058_s30  ;;  %s1236_s14 = scalar_lea.vmem %s1597_s7, 4096 }
  0x44   : > { %1078 = vmatpush1.bf16.msra.mxu1 %v1169_v15  ;;  %v1207_v43 = vld [vmem:[#allocation2 + $0xf4] ss:$8 sps:$4 sm:$0xff]   ;;  %v1205_v44 = vld [vmem:[#allocation2 + $0xf0] ss:$8 sps:$4 sm:$0xff]   ;;  %v262_v48 = vld [vmem:[%s1647_s2] sm:$0x3]  ;;  %p1237_p6 = scmp.ne.s32.totalorder %s1597_s7, %s1236_s14 }
  0x45   : > { %1012 = vmatmul.mubr.msk.bf16.gmra.mrb[4].mxu0 %vm334_vm0, %v1153_v9  ;;  %1063 = vmatprep.subr.bf16.mxu1 %v1174_v16  ;;  %v1475_v50 = vrot.slane %v262_v48, %v266_v47  ;;  %v1479_v51 = vrot.slane %v262_v48, %v270_v49  ;;  %p1661_p9 = scmp.ne.s32.totalorder %s1654_s28, 0  ;;  %s1308_s15 = smov [#allocation5]  }
  0x46   : > { %411 = vmatprep.mubr.bf16.mxu0 %v1307_v0  ;;  %729 = vmatpush1.bf16.msra.mxu0 %v1166_v12  ;;  %s1240_s16 = sshll.u32 %s1308_s15, 4  ;;  %s1241_s16 = int_to_ptr.vmem [resolvable:$false] %s1240_s16 }
  0x47   : > { %730 = vmatprep.subr.bf16.mxu0 %v1171_v13  ;;  %p1238_p10 = pnand %p1237_p6, %p1661_p9  ;;  %s1242_s17 = scalar_lea.vmem %s1241_s16, 8192 }
  0x48   : > { %1079 = vmatpush1.bf16.msra.mxu1 %v1172_v17  ;;  %p1243_p2 = scmp.lt.s32.totalorder %s1597_s7, %s1241_s16  ;;  %p1244_p3 = scmp.lt.s32.totalorder %s1242_s17, %s1236_s14 }
  0x49   : > { %1064 = vmatprep.subr.bf16.mxu1 %v1177_v18  ;;  %p1239_p12 = pneg %p1238_p10 }
  0x4a   : > { %731 = vmatpush1.bf16.msra.mxu0 %v1169_v15  ;;  %p1245_p4 = por %p1244_p3, %p1243_p2 }
  0x4b   : > { %732 = vmatprep.subr.bf16.mxu0 %v1174_v16 }
  0x4c   : > { %1080 = vmatpush1.bf16.msra.mxu1 %v1175_v20  ;;  %p1246_p7 = pnand %p1245_p4, %p1239_p12 }
  0x4d   : > { %1013 = vmatmul.mubr.msk.bf16.gmra.mrb[8].mxu0 %vm334_vm0, %v1154_v14  ;;  %1065 = vmatprep.subr.bf16.mxu1 %v1180_v21 }
  0x4e   : > { %421 = vmatprep.mubr.bf16.mxu0 %v1307_v0  ;;  %733 = vmatpush1.bf16.msra.mxu0 %v1172_v17 }
  0x4f   : > { %734 = vmatprep.subr.bf16.mxu0 %v1177_v18 }
  0x50   : > { %1081 = vmatpush1.bf16.msra.mxu1 %v1178_v22 }
  0x51   : > { %1066 = vmatprep.subr.bf16.mxu1 %v1183_v23 }
  0x52   : > { %735 = vmatpush1.bf16.msra.mxu0 %v1175_v20 }
  0x53   : > { %736 = vmatprep.subr.bf16.mxu0 %v1180_v21 }
  0x54   : > { %1082 = vmatpush1.bf16.msra.mxu1 %v1181_v25 }
  0x55   : > { %1014 = vmatmul.mubr.msk.bf16.gmra.mrb[12].mxu0 %vm334_vm0, %v1155_v19  ;;  %1067 = vmatprep.subr.bf16.mxu1 %v1186_v26 }
  0x56   : > { %431 = vmatprep.mubr.bf16.mxu0 %v1307_v0  ;;  %737 = vmatpush1.bf16.msra.mxu0 %v1178_v22 }
  0x57   : > { %738 = vmatprep.subr.bf16.mxu0 %v1183_v23 }
  0x58   : > { %1083 = vmatpush1.bf16.msra.mxu1 %v1184_v27 }
  0x59   : > { %1068 = vmatprep.subr.bf16.mxu1 %v1189_v28 }
  0x5a   : > { %739 = vmatpush1.bf16.msra.mxu0 %v1181_v25 }
  0x5b   : > { %740 = vmatprep.subr.bf16.mxu0 %v1186_v26 }
  0x5c   : > { %1084 = vmatpush1.bf16.msra.mxu1 %v1187_v30 }
  0x5d   : > { %1015 = vmatmul.mubr.msk.bf16.gmra.mrb[16].mxu0 %vm334_vm0, %v1156_v24  ;;  %1069 = vmatprep.subr.bf16.mxu1 %v1192_v31 }
  0x5e   : > { %441 = vmatprep.mubr.bf16.mxu0 %v1307_v0  ;;  %741 = vmatpush1.bf16.msra.mxu0 %v1184_v27 }
  0x5f   : > { %742 = vmatprep.subr.bf16.mxu0 %v1189_v28 }
  0x60   : > { %1085 = vmatpush1.bf16.msra.mxu1 %v1190_v32 }
  0x61   : > { %1070 = vmatprep.subr.bf16.mxu1 %v1195_v33 }
  0x62   : > { %743 = vmatpush1.bf16.msra.mxu0 %v1187_v30 }
  0x63   : > { %744 = vmatprep.subr.bf16.mxu0 %v1192_v31 }
  0x64   : > { %1086 = vmatpush1.bf16.msra.mxu1 %v1193_v35 }
  0x65   : > { %1016 = vmatmul.mubr.msk.bf16.gmra.mrb[20].mxu0 %vm334_vm0, %v1157_v29  ;;  %1071 = vmatprep.subr.bf16.mxu1 %v1198_v36 }
  0x66   : > { %451 = vmatprep.mubr.bf16.mxu0 %v1307_v0  ;;  %745 = vmatpush1.bf16.msra.mxu0 %v1190_v32 }
  0x67   : > { %746 = vmatprep.subr.bf16.mxu0 %v1195_v33 }
  0x68   : > { %1087 = vmatpush1.bf16.msra.mxu1 %v1196_v37 }
  0x69   : > { %1072 = vmatprep.subr.bf16.mxu1 %v1201_v38 }
  0x6a   : > { %747 = vmatpush1.bf16.msra.mxu0 %v1193_v35 }
  0x6b   : > { %748 = vmatprep.subr.bf16.mxu0 %v1198_v36 }
  0x6c   : > { %1088 = vmatpush1.bf16.msra.mxu1 %v1199_v40 }
  0x6d   : > { %1017 = vmatmul.mubr.msk.bf16.gmra.mrb[24].mxu0 %vm334_vm0, %v1158_v34  ;;  %1073 = vmatprep.subr.bf16.mxu1 %v1204_v41 }
  0x6e   : > { %461 = vmatprep.mubr.bf16.mxu0 %v1307_v0  ;;  %749 = vmatpush1.bf16.msra.mxu0 %v1196_v37 }
  0x6f   : > { %750 = vmatprep.subr.bf16.mxu0 %v1201_v38 }
  0x70   : > { %1089 = vmatpush1.bf16.msra.mxu1 %v1202_v42 }
  0x71   : > { %1074 = vmatprep.subr.bf16.mxu1 %v1207_v43 }
  0x72   : > { %751 = vmatpush1.bf16.msra.mxu0 %v1199_v40 }
  0x73   : > { %752 = vmatprep.subr.bf16.mxu0 %v1204_v41 }
  0x74   : > { %1090 = vmatpush1.bf16.msra.mxu1 %v1205_v44 }
  0x75   : > { %1018 = vmatmul.mubr.msk.bf16.gmra.mrb[28].mxu0 %vm334_vm0, %v1159_v39 }
  0x76   : > { %753 = vmatpush1.bf16.msra.mxu0 %v1202_v42 }
  0x77   : > { %754 = vmatprep.subr.bf16.mxu0 %v1207_v43 }
  0x7a   : > { %755 = vmatpush1.bf16.msra.mxu0 %v1205_v44 }
 0x110   : > { %v393_v52 = vpop.f32.mrb[0].mxu0 }
 0x111   : > { %v394_v53 = vadd.f32 %v393_v52, %v1475_v50  ;;  %v395_v54 = vpop.f32.mrb[1].mxu0 }
 0x112   : > { %v396_v55 = vadd.f32 %v395_v54, %v1479_v51  ;;  %v397_v56 = vpop.f32.mrb[2].mxu0 }
 0x113   : > { %v398_v57 = vadd.f32 %v397_v56, %v1475_v50  ;;  %v399_v58 = vpop.f32.mrb[3].mxu0  ;;  %v472_v60 = vmax.f32 %v394_v53, 0.0 }
 0x114   : > { %v400_v59 = vadd.f32 %v399_v58, %v1479_v51  ;;  %v473_v62 = vmax.f32 %v396_v55, 0.0 }
 0x115   : > { %v474_v61 = vmax.f32 %v398_v57, 0.0 }
 0x116   : > { %v475_v63 = vmax.f32 %v400_v59, 0.0 }
 0x117   : > { %v504_v0 = vpack.c.bf16 %v474_v61, %v472_v60 }
 0x118   : > { %v505_v1 = vpack.c.bf16 %v475_v63, %v473_v62  ;;  %v403_v2 = vpop.f32.mrb[4].mxu0 }
 0x119   : > { %v404_v3 = vadd.f32 %v403_v2, %v1475_v50  ;;  %v405_v4 = vpop.f32.mrb[5].mxu0 }
 0x11a   : > { %v406_v5 = vadd.f32 %v405_v4, %v1479_v51  ;;  %v407_v6 = vpop.f32.mrb[6].mxu0  ;;  %756 = vmatprep.mubr.bf16.mxu0 %v505_v1 }
 0x11b   : > { %v408_v7 = vadd.f32 %v407_v6, %v1475_v50  ;;  %v409_v8 = vpop.f32.mrb[7].mxu0  ;;  %757 = vmatmul.mubr.bf16.vlgmr.msra.gmra.mrb[32].mxu0 %v504_v0  ;;  %v476_v10 = vmax.f32 %v404_v3, 0.0 }
 0x11c   : > { %v410_v9 = vadd.f32 %v409_v8, %v1479_v51  ;;  %v477_v12 = vmax.f32 %v406_v5, 0.0 }
 0x11d   : > { %v478_v11 = vmax.f32 %v408_v7, 0.0 }
 0x11e   : > { %v479_v13 = vmax.f32 %v410_v9, 0.0 }
 0x11f   : > { %v506_v14 = vpack.c.bf16 %v478_v11, %v476_v10 }
 0x120   : > { %v507_v15 = vpack.c.bf16 %v479_v13, %v477_v12  ;;  %v413_v16 = vpop.f32.mrb[8].mxu0 }
 0x121   : > { %v414_v17 = vadd.f32 %v413_v16, %v1475_v50  ;;  %v415_v18 = vpop.f32.mrb[9].mxu0 }
 0x122   : > { %v416_v19 = vadd.f32 %v415_v18, %v1479_v51  ;;  %v417_v20 = vpop.f32.mrb[10].mxu0  ;;  %766 = vmatprep.mubr.bf16.mxu0 %v507_v15 }
 0x123   : > { %v418_v21 = vadd.f32 %v417_v20, %v1475_v50  ;;  %v419_v22 = vpop.f32.mrb[11].mxu0  ;;  %767 = vmatmul.mubr.bf16.gmra.mrb[36].mxu0 %v506_v14  ;;  %v480_v24 = vmax.f32 %v414_v17, 0.0 }
 0x124   : > { %v420_v23 = vadd.f32 %v419_v22, %v1479_v51  ;;  %v481_v26 = vmax.f32 %v416_v19, 0.0 }
 0x125   : > { %v482_v25 = vmax.f32 %v418_v21, 0.0 }
 0x126   : > { %v483_v27 = vmax.f32 %v420_v23, 0.0 }
 0x127   : > { %v508_v28 = vpack.c.bf16 %v482_v25, %v480_v24 }
 0x128   : > { %v509_v29 = vpack.c.bf16 %v483_v27, %v481_v26  ;;  %v423_v30 = vpop.f32.mrb[12].mxu0 }
 0x129   : > { %v424_v31 = vadd.f32 %v423_v30, %v1475_v50  ;;  %v425_v32 = vpop.f32.mrb[13].mxu0 }
 0x12a   : > { %v426_v33 = vadd.f32 %v425_v32, %v1479_v51  ;;  %v427_v34 = vpop.f32.mrb[14].mxu0  ;;  %776 = vmatprep.mubr.bf16.mxu0 %v509_v29 }
 0x12b   : > { %v428_v35 = vadd.f32 %v427_v34, %v1475_v50  ;;  %v429_v36 = vpop.f32.mrb[15].mxu0  ;;  %777 = vmatmul.mubr.bf16.gmra.mrb[40].mxu0 %v508_v28  ;;  %v484_v38 = vmax.f32 %v424_v31, 0.0 }
 0x12c   : > { %v430_v37 = vadd.f32 %v429_v36, %v1479_v51  ;;  %v485_v40 = vmax.f32 %v426_v33, 0.0 }
 0x12d   : > { %v486_v39 = vmax.f32 %v428_v35, 0.0 }
 0x12e   : > { %v487_v41 = vmax.f32 %v430_v37, 0.0 }
 0x12f   : > { %v510_v42 = vpack.c.bf16 %v486_v39, %v484_v38 }
 0x130   : > { %v433_v43 = vpop.f32.mrb[16].mxu0  ;;  %v511_v44 = vpack.c.bf16 %v487_v41, %v485_v40  ;;  %v552_v41 = vld [vmem:[%s1649_s4] sm:$0x3] }
 0x131   : > { %v434_v45 = vadd.f32 %v433_v43, %v1475_v50  ;;  %v435_v48 = vpop.f32.mrb[17].mxu0 }
 0x132   : > { %v436_v52 = vadd.f32 %v435_v48, %v1479_v51  ;;  %v437_v53 = vpop.f32.mrb[18].mxu0  ;;  %786 = vmatprep.mubr.bf16.mxu1 %v511_v44 }
 0x133   : > { %v438_v54 = vadd.f32 %v437_v53, %v1475_v50  ;;  %v439_v55 = vpop.f32.mrb[19].mxu0  ;;  %787 = vmatmul.mubr.bf16.vlgmr.msra.gmra.mrb[0].mxu1 %v510_v42  ;;  %v488_v57 = vmax.f32 %v434_v45, 0.0 }
 0x134   : > { %v440_v56 = vadd.f32 %v439_v55, %v1479_v51  ;;  %v489_v59 = vmax.f32 %v436_v52, 0.0 }
 0x135   : > { %v490_v58 = vmax.f32 %v438_v54, 0.0 }
 0x136   : > { %v491_v60 = vmax.f32 %v440_v56, 0.0 }
 0x137   : > { %v512_v61 = vpack.c.bf16 %v490_v58, %v488_v57 }
 0x138   : > { %v513_v62 = vpack.c.bf16 %v491_v60, %v489_v59  ;;  %v443_v63 = vpop.f32.mrb[20].mxu0 }
 0x139   : > { %v444_v0 = vadd.f32 %v443_v63, %v1475_v50  ;;  %v445_v1 = vpop.f32.mrb[21].mxu0 }
 0x13a   : > { %v446_v2 = vadd.f32 %v445_v1, %v1479_v51  ;;  %v447_v3 = vpop.f32.mrb[22].mxu0  ;;  %796 = vmatprep.mubr.bf16.mxu1 %v513_v62 }
 0x13b   : > { %v448_v4 = vadd.f32 %v447_v3, %v1475_v50  ;;  %v449_v5 = vpop.f32.mrb[23].mxu0  ;;  %797 = vmatmul.mubr.bf16.gmra.mrb[4].mxu1 %v512_v61  ;;  %v492_v7 = vmax.f32 %v444_v0, 0.0 }
 0x13c   : > { %v450_v6 = vadd.f32 %v449_v5, %v1479_v51  ;;  %v493_v9 = vmax.f32 %v446_v2, 0.0 }
 0x13d   : > { %v494_v8 = vmax.f32 %v448_v4, 0.0 }
 0x13e   : > { %v495_v10 = vmax.f32 %v450_v6, 0.0 }
 0x13f   : > { %v514_v11 = vpack.c.bf16 %v494_v8, %v492_v7 }
 0x140   : > { %v515_v12 = vpack.c.bf16 %v495_v10, %v493_v9  ;;  %v453_v13 = vpop.f32.mrb[24].mxu0 }
 0x141   : > { %v454_v14 = vadd.f32 %v453_v13, %v1475_v50  ;;  %v455_v15 = vpop.f32.mrb[25].mxu0 }
 0x142   : > { %v456_v16 = vadd.f32 %v455_v15, %v1479_v51  ;;  %v457_v17 = vpop.f32.mrb[26].mxu0  ;;  %806 = vmatprep.mubr.bf16.mxu1 %v515_v12 }
 0x143   : > { %v458_v18 = vadd.f32 %v457_v17, %v1475_v50  ;;  %v459_v19 = vpop.f32.mrb[27].mxu0  ;;  %807 = vmatmul.mubr.bf16.gmra.mrb[8].mxu1 %v514_v11  ;;  %v496_v21 = vmax.f32 %v454_v14, 0.0 }
 0x144   : > { %v460_v20 = vadd.f32 %v459_v19, %v1479_v51  ;;  %v497_v23 = vmax.f32 %v456_v16, 0.0 }
 0x145   : > { %v498_v22 = vmax.f32 %v458_v18, 0.0 }
 0x146   : > { %v499_v24 = vmax.f32 %v460_v20, 0.0 }
 0x147   : > { %v516_v25 = vpack.c.bf16 %v498_v22, %v496_v21 }
 0x148   : > { %v517_v26 = vpack.c.bf16 %v499_v24, %v497_v23  ;;  %v463_v27 = vpop.f32.mrb[28].mxu0 }
 0x149   : > { %v464_v28 = vadd.f32 %v463_v27, %v1475_v50  ;;  %v465_v29 = vpop.f32.mrb[29].mxu0 }
 0x14a   : > { %v466_v30 = vadd.f32 %v465_v29, %v1479_v51  ;;  %v467_v31 = vpop.f32.mrb[30].mxu0  ;;  %816 = vmatprep.mubr.bf16.mxu1 %v517_v26 }
 0x14b   : > { %v468_v32 = vadd.f32 %v467_v31, %v1475_v50  ;;  %v469_v33 = vpop.f32.mrb[31].mxu0  ;;  %817 = vmatmul.mubr.bf16.gmra.mrb[12].mxu1 %v516_v25  ;;  %v500_v35 = vmax.f32 %v464_v28, 0.0  ;;  %v1519_v50 = vrot.slane %v552_v41, %v266_v47 }
 0x14c   : > { %v470_v34 = vadd.f32 %v469_v33, %v1479_v51  ;;  %v501_v37 = vmax.f32 %v466_v30, 0.0  ;;  %v1523_v51 = vrot.slane %v552_v41, %v270_v49 }
 0x14d   : > { %v502_v36 = vmax.f32 %v468_v32, 0.0 }
 0x14e   : > { %v503_v38 = vmax.f32 %v470_v34, 0.0 }
 0x14f   : > { %v518_v39 = vpack.c.bf16 %v502_v36, %v500_v35 }
 0x150   : > { %v519_v40 = vpack.c.bf16 %v503_v38, %v501_v37 }
 0x152   : > { %826 = vmatprep.mubr.bf16.mxu1 %v519_v40 }
 0x153   : > { %827 = vmatmul.mubr.bf16.gmra.mrb[16].mxu1 %v518_v39 }
 0x1ee   : > { %v758_v42 = vpop.f32.mrb[32].mxu0 }
 0x1ef   : > { %v759_v43 = vadd.f32 %v758_v42, %v1519_v50  ;;  %v760_v44 = vpop.f32.mrb[33].mxu0 }
 0x1f0   : > { %v761_v45 = vadd.f32 %v760_v44, %v1523_v51  ;;  %v762_v48 = vpop.f32.mrb[34].mxu0 }
 0x1f1   : > { %v837_v52 = vmax.f32 %v759_v43, 0.0  ;;  %v763_v53 = vadd.f32 %v762_v48, %v1519_v50  ;;  %v764_v54 = vpop.f32.mrb[35].mxu0 }
 0x1f2   : > { %v838_v55 = vmax.f32 %v761_v45, 0.0  ;;  %v765_v47 = vadd.f32 %v764_v54, %v1523_v51 }
 0x1f3   : > { %869 = vst [vmem:[%s1531_s10] sm:$0xff] %v837_v52  ;;  %v839_v46 = vmax.f32 %v763_v53, 0.0 }
 0x1f4   : > { %870 = vst [vmem:[%s1531_s10 + $0x8] sm:$0xff] %v838_v55  ;;  %v840_v49 = vmax.f32 %v765_v47, 0.0 }
 0x1f5   : > { %871 = vst [vmem:[%s1531_s10 + $0x10] sm:$0xff] %v839_v46 }
 0x1f6   : > { %872 = vst [vmem:[%s1531_s10 + $0x18] sm:$0xff] %v840_v49  ;;  %v768_v56 = vpop.f32.mrb[36].mxu0 }
 0x1f7   : > { %v769_v57 = vadd.f32 %v768_v56, %v1519_v50  ;;  %v770_v58 = vpop.f32.mrb[37].mxu0 }
 0x1f8   : > { %v771_v59 = vadd.f32 %v770_v58, %v1523_v51  ;;  %v772_v60 = vpop.f32.mrb[38].mxu0 }
 0x1f9   : > { %v841_v61 = vmax.f32 %v769_v57, 0.0  ;;  %v773_v62 = vadd.f32 %v772_v60, %v1519_v50  ;;  %v774_v63 = vpop.f32.mrb[39].mxu0 }
 0x1fa   : > { %v842_v0 = vmax.f32 %v771_v59, 0.0  ;;  %v775_v1 = vadd.f32 %v774_v63, %v1523_v51 }
 0x1fb   : > { %873 = vst [vmem:[%s1531_s10 + $0x20] sm:$0xff] %v841_v61  ;;  %v843_v2 = vmax.f32 %v773_v62, 0.0 }
 0x1fc   : > { %874 = vst [vmem:[%s1531_s10 + $0x28] sm:$0xff] %v842_v0  ;;  %v844_v3 = vmax.f32 %v775_v1, 0.0 }
 0x1fd   : > { %875 = vst [vmem:[%s1531_s10 + $0x30] sm:$0xff] %v843_v2 }
 0x1fe   : > { %876 = vst [vmem:[%s1531_s10 + $0x38] sm:$0xff] %v844_v3  ;;  %v778_v4 = vpop.f32.mrb[40].mxu0 }
 0x1ff   : > { %v779_v5 = vadd.f32 %v778_v4, %v1519_v50  ;;  %v780_v6 = vpop.f32.mrb[41].mxu0 }
 0x200   : > { %v781_v7 = vadd.f32 %v780_v6, %v1523_v51  ;;  %v782_v8 = vpop.f32.mrb[42].mxu0 }
 0x201   : > { %v845_v9 = vmax.f32 %v779_v5, 0.0  ;;  %v783_v10 = vadd.f32 %v782_v8, %v1519_v50  ;;  %v784_v11 = vpop.f32.mrb[43].mxu0 }
 0x202   : > { %v846_v12 = vmax.f32 %v781_v7, 0.0  ;;  %v785_v13 = vadd.f32 %v784_v11, %v1523_v51 }
 0x203   : > { %877 = vst [vmem:[%s1531_s10 + $0x40] sm:$0xff] %v845_v9  ;;  %v847_v14 = vmax.f32 %v783_v10, 0.0 }
 0x204   : > { %878 = vst [vmem:[%s1531_s10 + $0x48] sm:$0xff] %v846_v12  ;;  %v848_v15 = vmax.f32 %v785_v13, 0.0 }
 0x205   : > { %879 = vst [vmem:[%s1531_s10 + $0x50] sm:$0xff] %v847_v14 }
 0x206   : > { %880 = vst [vmem:[%s1531_s10 + $0x58] sm:$0xff] %v848_v15  ;;  %v788_v16 = vpop.f32.mrb[0].mxu1 }
 0x207   : > { %v789_v17 = vadd.f32 %v788_v16, %v1519_v50  ;;  %v790_v18 = vpop.f32.mrb[1].mxu1 }
 0x208   : > { %v791_v19 = vadd.f32 %v790_v18, %v1523_v51  ;;  %v792_v20 = vpop.f32.mrb[2].mxu1 }
 0x209   : > { %v849_v21 = vmax.f32 %v789_v17, 0.0  ;;  %v793_v22 = vadd.f32 %v792_v20, %v1519_v50  ;;  %v794_v23 = vpop.f32.mrb[3].mxu1 }
 0x20a   : > { %v850_v24 = vmax.f32 %v791_v19, 0.0  ;;  %v795_v25 = vadd.f32 %v794_v23, %v1523_v51 }
 0x20b   : > { %881 = vst [vmem:[%s1531_s10 + $0x60] sm:$0xff] %v849_v21  ;;  %v851_v26 = vmax.f32 %v793_v22, 0.0 }
 0x20c   : > { %882 = vst [vmem:[%s1531_s10 + $0x68] sm:$0xff] %v850_v24  ;;  %v852_v27 = vmax.f32 %v795_v25, 0.0 }
 0x20d   : > { %883 = vst [vmem:[%s1531_s10 + $0x70] sm:$0xff] %v851_v26 }
 0x20e   : > { %884 = vst [vmem:[%s1531_s10 + $0x78] sm:$0xff] %v852_v27  ;;  %v798_v28 = vpop.f32.mrb[4].mxu1 }
 0x20f   : > { %v799_v29 = vadd.f32 %v798_v28, %v1519_v50  ;;  %v800_v30 = vpop.f32.mrb[5].mxu1 }
 0x210   : > { %v801_v31 = vadd.f32 %v800_v30, %v1523_v51  ;;  %v802_v32 = vpop.f32.mrb[6].mxu1 }
 0x211   : > { %v853_v33 = vmax.f32 %v799_v29, 0.0  ;;  %v803_v34 = vadd.f32 %v802_v32, %v1519_v50  ;;  %v804_v35 = vpop.f32.mrb[7].mxu1 }
 0x212   : > { %v854_v36 = vmax.f32 %v801_v31, 0.0  ;;  %v805_v37 = vadd.f32 %v804_v35, %v1523_v51 }
 0x213   : > { %885 = vst [vmem:[%s1531_s10 + $0x80] sm:$0xff] %v853_v33  ;;  %v855_v38 = vmax.f32 %v803_v34, 0.0 }
 0x214   : > { %886 = vst [vmem:[%s1531_s10 + $0x88] sm:$0xff] %v854_v36  ;;  %v856_v39 = vmax.f32 %v805_v37, 0.0 }
 0x215   : > { %887 = vst [vmem:[%s1531_s10 + $0x90] sm:$0xff] %v855_v38 }
 0x216   : > { %888 = vst [vmem:[%s1531_s10 + $0x98] sm:$0xff] %v856_v39  ;;  %v808_v40 = vpop.f32.mrb[8].mxu1 }
 0x217   : > { %v809_v41 = vadd.f32 %v808_v40, %v1519_v50  ;;  %v810_v42 = vpop.f32.mrb[9].mxu1 }
 0x218   : > { %v811_v43 = vadd.f32 %v810_v42, %v1523_v51  ;;  %v812_v44 = vpop.f32.mrb[10].mxu1 }
 0x219   : > { %v857_v45 = vmax.f32 %v809_v41, 0.0  ;;  %v813_v48 = vadd.f32 %v812_v44, %v1519_v50  ;;  %v814_v52 = vpop.f32.mrb[11].mxu1 }
 0x21a   : > { %v858_v53 = vmax.f32 %v811_v43, 0.0  ;;  %v815_v54 = vadd.f32 %v814_v52, %v1523_v51 }
 0x21b   : > { %889 = vst [vmem:[%s1531_s10 + $0xa0] sm:$0xff] %v857_v45  ;;  %v859_v55 = vmax.f32 %v813_v48, 0.0 }
 0x21c   : > { %890 = vst [vmem:[%s1531_s10 + $0xa8] sm:$0xff] %v858_v53  ;;  %v860_v47 = vmax.f32 %v815_v54, 0.0 }
 0x21d   : > { %891 = vst [vmem:[%s1531_s10 + $0xb0] sm:$0xff] %v859_v55 }
 0x21e   : > { %892 = vst [vmem:[%s1531_s10 + $0xb8] sm:$0xff] %v860_v47  ;;  %v818_v46 = vpop.f32.mrb[12].mxu1 }
 0x21f   : > { %v819_v49 = vadd.f32 %v818_v46, %v1519_v50  ;;  %v820_v56 = vpop.f32.mrb[13].mxu1 }
 0x220   : > { %v821_v57 = vadd.f32 %v820_v56, %v1523_v51  ;;  %v822_v58 = vpop.f32.mrb[14].mxu1 }
 0x221   : > { %v861_v59 = vmax.f32 %v819_v49, 0.0  ;;  %v823_v60 = vadd.f32 %v822_v58, %v1519_v50  ;;  %v824_v61 = vpop.f32.mrb[15].mxu1 }
 0x222   : > { %v862_v62 = vmax.f32 %v821_v57, 0.0  ;;  %v825_v63 = vadd.f32 %v824_v61, %v1523_v51 }
 0x223   : > { %893 = vst [vmem:[%s1531_s10 + $0xc0] sm:$0xff] %v861_v59  ;;  %v863_v0 = vmax.f32 %v823_v60, 0.0 }
 0x224   : > { %894 = vst [vmem:[%s1531_s10 + $0xc8] sm:$0xff] %v862_v62  ;;  %v864_v1 = vmax.f32 %v825_v63, 0.0 }
 0x225   : > { %895 = vst [vmem:[%s1531_s10 + $0xd0] sm:$0xff] %v863_v0 }
 0x226   : > { %896 = vst [vmem:[%s1531_s10 + $0xd8] sm:$0xff] %v864_v1  ;;  %v828_v2 = vpop.f32.mrb[16].mxu1 }
 0x227   : > { %v829_v3 = vadd.f32 %v828_v2, %v1519_v50  ;;  %v830_v4 = vpop.f32.mrb[17].mxu1 }
 0x228   : > { %v831_v5 = vadd.f32 %v830_v4, %v1523_v51  ;;  %v832_v6 = vpop.f32.mrb[18].mxu1 }
 0x229   : > { %v865_v7 = vmax.f32 %v829_v3, 0.0  ;;  %v833_v8 = vadd.f32 %v832_v6, %v1519_v50  ;;  %v834_v9 = vpop.f32.mrb[19].mxu1 }
 0x22a   : > { %v866_v10 = vmax.f32 %v831_v5, 0.0  ;;  %v835_v11 = vadd.f32 %v834_v9, %v1523_v51 }
 0x22b   : > { %897 = vst [vmem:[%s1531_s10 + $0xe0] sm:$0xff] %v865_v7  ;;  %v867_v12 = vmax.f32 %v833_v8, 0.0 }
 0x22c   : > { %898 = vst [vmem:[%s1531_s10 + $0xe8] sm:$0xff] %v866_v10  ;;  %v868_v13 = vmax.f32 %v835_v11, 0.0 }
 0x22d   : > { %899 = vst [vmem:[%s1531_s10 + $0xf0] sm:$0xff] %v867_v12 }
 0x22e   : > { %900 = vst [vmem:[%s1531_s10 + $0xf8] sm:$0xff] %v868_v13 }
 0x22f   : > { %1249 = shalt.err (!%p1246_p7)
}
 0x230   : > { %s1250_s23 = scalar_lea.hbm %s1595_s13, 4096  ;;  %s1254_s6 = scalar_lea.hbm %s1650_s5, 8192 }
 0x231   : > { %p1251_p8 = scmp.ne.s32.totalorder %s1595_s13, %s1250_s23  ;;  %p1255_p1 = scmp.lt.u32.totalorder %s1595_s13, %s1650_s5 }
 0x232   : > { %p1256_p0 = scmp.lt.u32.totalorder %s1254_s6, %s1250_s23  ;;  %p1258_p6 = scmp.lt.u32.totalorder %s1250_s23, %s1595_s13 }
 0x233   : > { %p1252_p11 = pnand %p1251_p8, %p1661_p9 }
 0x234   : > { %p1257_p5 = por %p1256_p0, %p1255_p1 }
 0x235   : > { %p1253_p13 = pneg %p1252_p11 }
 0x236   : > { %p1259_p10 = por %p1258_p6, %p1257_p5 }
 0x238   : > { %p1260_p12 = pnand %p1259_p10, %p1253_p13 }
 0x23a   : > { %1263 = shalt.err (!%p1260_p12)
}
 0x23b   : > { %s1309_s10 = smov 256   ;;  %s1310_s30 = smov 16  }
 0x23c   : > { %1095 = dma.vmem_to_hbm [thread:$0]  (%p1661_p9), %s1597_s7, 4096, %s1595_s13, %s1604_s22, %s1309_s10, %s1309_s10, %s1310_s30  }
 0x23d PF: > { %p1107_p2 = scmp.ge.s32.totalorder %s1302_s21, 2  ;;  %s931_s11 = sand.u32 1, %s1290_s18  }
 0x23e   : > { %p1662_p3 = scmp.ne.s32.totalorder %s1655_s29, 0  ;;  %s932_s12 = scalar_lea.sflag [#allocation4], %s931_s11 }
 0x240   : > { %p1102_p4 = pnand %p1107_p2, %p1662_p3 }
 0x242   : > { %1285 = dma.done.wait (!%p1102_p4), %s932_s12, 4096  }
 0x243   : > { %1287 = vsyncadd (!%p1102_p4), %s932_s12, 4294963200  ;;  %p16_p7 = scmp.ge.s32.totalorder %s1366_s24, 4   ;;  %s1663_s18 = smov %s1294_s19 }
 0x244   : > { %s1664_s19 = smov %s1298_s20  ;;  %s1665_s20 = smov %s1377_s27 }
 0x245   : > { %s1666_s21 = smov %s1366_s24  ;;  %18 = sbr.rel (!%p16_p7) target bundleno = 4 (0x4), region = 80 }
 0x24c   :  { %937 = vsyncpa [#allocation3], 1 }
 0x24d   :  { %939 = vsyncpa [#allocation3 + $0x1], 1 }
 0x24e   :  { %940 = vsyncpa [#allocation4], 1 }
 0x24f   :  { %942 = vsyncpa [#allocation4 + $0x1], 1 }

</bundles_post_ra>
